<compile_context>
chip_gen: v7x
topology: tpu7x:2x2x1
jax: 0.10.0
libtpu: 0.0.40
codegen_flags: <defaults>
</compile_context>

<pallas_src>
import functools

import jax
import jax.numpy as jnp
from jax import lax
from jax.experimental import pallas as pl
from jax.experimental.pallas import tpu as pltpu

_LOG2E = 1.4426950408889634


def _kv_projection_kernel(x_ref, wkv_ref, bkv_ref, kv_ref):
    """Project one sequence tile of x into the fused [K | V] space (stored in MXU dtype)."""
    kvp = jnp.dot(x_ref[0], wkv_ref[...], preferred_element_type=jnp.float32)
    kv_ref[0] = (kvp + bkv_ref[...]).astype(kv_ref.dtype)


def _flash_attention_kernel(
    xq_ref, kv_ref, wq_ref, bq_ref,        # inputs
    o_ref,                                 # output
    q_scr, m_scr, l_scr, acc_scr,          # scratch
    *, scale_log2e, mxu_dtype,
):
    """One (batch b, q-tile qi, kv-tile ki) step of flash-style self attention."""
    kv_i = pl.program_id(2)
    d_pad = wq_ref.shape[1]                # lane-padded attention dim (multiple of 128)

    # ---- once per q-tile: project Q (scale * log2(e) folded in), reset softmax stats ----
    @pl.when(kv_i == 0)
    def _():
        q = jnp.dot(xq_ref[0], wq_ref[...], preferred_element_type=jnp.float32)
        q_scr[...] = ((q + bq_ref[...]) * scale_log2e).astype(q_scr.dtype)
        m_scr[...] = jnp.full(m_scr.shape, -jnp.inf, m_scr.dtype)
        l_scr[...] = jnp.zeros(l_scr.shape, l_scr.dtype)
        acc_scr[...] = jnp.zeros(acc_scr.shape, acc_scr.dtype)

    # ---- every kv step: pre-projected K/V tile (bf16, lane-aligned halves) ----
    kvp = kv_ref[0]                        # (Tk, 2*d_pad)
    k = kvp[:, :d_pad]
    v = kvp[:, d_pad:]

    # scores in the log2 domain (log2(e) already folded into Q): contract last axes directly.
    s = lax.dot_general(
        q_scr[...], k,
        dimension_numbers=(((1,), (1,)), ((), ())),
        preferred_element_type=jnp.float32,
    )                                      # (Tq, Tk), f32

    # ---- online softmax update (statistics in f32, exp2 path) ----
    m_prev = m_scr[...]
    m_new = jnp.maximum(m_prev, jnp.max(s, axis=-1, keepdims=True))
    alpha = jnp.exp2(m_prev - m_new)
    p = jnp.exp2(s - m_new)
    l_scr[...] = alpha * l_scr[...] + jnp.sum(p, axis=-1, keepdims=True)
    acc_scr[...] = alpha * acc_scr[...] + jnp.dot(
        p.astype(mxu_dtype), v, preferred_element_type=jnp.float32)
    m_scr[...] = m_new

    # ---- last kv step: normalize and store (lane-dense: d_pad % 128 == 0) ----
    @pl.when(kv_i == pl.num_programs(2) - 1)
    def _():
        inv_l = pl.reciprocal(l_scr[...], approx=True)   # EUP slot, ~1e-3 rel err
        o_ref[0] = (acc_scr[...] * inv_l).astype(o_ref.dtype)


def _pick_tile(size, pref, preferred_multiple=8):
    """Largest divisor of `size` <= pref, preferring multiples of `preferred_multiple`,
    then multiples of 8, else the full size."""
    fallback = None
    for t in range(min(size, pref), 0, -1):
        if size % t:
            continue
        if t % preferred_multiple == 0:
            return t
        if fallback is None and t % 8 == 0:
            fallback = t
    return fallback if fallback is not None else size


def self_attention(x, wq, bq, wk, bk, wv, bv, *,
                   tq=512, tk=512, mxu_dtype=jnp.bfloat16,
                   vmem_limit_bytes=48 * 1024 * 1024):
    """Pallas TPU forward of the PyTorch SelfAttention module.

    x: (B, S, Dm); w*: (Dm, Da); b*: (Da,). Returns (B, S, Da).
    mxu_dtype=jnp.bfloat16 reaches MXU peak (f32 stats/accum; ~1e-2 accuracy);
    pass jnp.float32 for a bit-accurate-ish path.
    """
    B, S, Dm = x.shape
    Da = wq.shape[1]
    # torch divides by K.shape[-1]**0.5 == attention_dim; log2(e) folded so the kernel
    # can use exp2 (identical softmax values, cheaper transcendental path).
    scale_log2e = _LOG2E / (Da ** 0.5)

    # Pad the attention dim up to a multiple of 128 (zero columns -> math unchanged).
    d_pad = ((Da + 127) // 128) * 128
    pad = d_pad - Da

    def pad_w(w):
        return jnp.pad(w, ((0, 0), (0, pad))) if pad else w

    def pad_b(b):
        return jnp.pad(b, ((0, pad),)) if pad else b

    # Stage x and weights in the MXU dtype on the host: halves HBM traffic / VMEM
    # double-buffers and removes per-tile VPU casts inside the kernel.
    x_c = x.astype(mxu_dtype)
    wq_p = pad_w(wq).astype(mxu_dtype)                                          # (Dm, d_pad)
    bq_p = pad_b(bq).reshape(1, d_pad).astype(jnp.float32)
    wkv = jnp.concatenate([pad_w(wk), pad_w(wv)], axis=1).astype(mxu_dtype)     # (Dm, 2*d_pad)
    bkv = jnp.concatenate([pad_b(bk), pad_b(bv)]).reshape(1, 2 * d_pad).astype(jnp.float32)

    q_mult = 16 if mxu_dtype == jnp.bfloat16 else 8
    Tq = _pick_tile(S, tq, q_mult)
    Tk = _pick_tile(S, tk, 128)     # Tk is the lane dim of the (Tq, Tk) score tile

    # ---- pass 1: project K/V once per (batch, kv tile) — not once per (qi, ki) ----
    kv_proj = pl.pallas_call(
        _kv_projection_kernel,
        out_shape=jax.ShapeDtypeStruct((B, S, 2 * d_pad), mxu_dtype),
        grid_spec=pltpu.PrefetchScalarGridSpec(
            num_scalar_prefetch=0,
            grid=(B, S // Tk),
            in_specs=[
                pl.BlockSpec((1, Tk, Dm), lambda b, i: (b, i, 0)),       # x tile
                pl.BlockSpec((Dm, 2 * d_pad), lambda b, i: (0, 0)),      # W[k|v] fused
                pl.BlockSpec((1, 2 * d_pad), lambda b, i: (0, 0)),       # b[k|v] fused
            ],
            out_specs=pl.BlockSpec((1, Tk, 2 * d_pad), lambda b, i: (b, i, 0)),
        ),
        compiler_params=pltpu.CompilerParams(
            dimension_semantics=("parallel", "parallel"),
            vmem_limit_bytes=vmem_limit_bytes,
        ),
    )(x_c, wkv, bkv)

    # ---- pass 2: flash attention streaming the projected KV ----
    kernel = functools.partial(
        _flash_attention_kernel, scale_log2e=scale_log2e, mxu_dtype=mxu_dtype)

    out_padded = pl.pallas_call(
        kernel,
        out_shape=jax.ShapeDtypeStruct((B, S, d_pad), x.dtype),
        grid_spec=pltpu.PrefetchScalarGridSpec(
            num_scalar_prefetch=0,
            grid=(B, S // Tq, S // Tk),
            in_specs=[
                pl.BlockSpec((1, Tq, Dm), lambda b, qi, ki: (b, qi, 0)),          # x (query rows)
                pl.BlockSpec((1, Tk, 2 * d_pad), lambda b, qi, ki: (b, ki, 0)),   # projected K|V
                pl.BlockSpec((Dm, d_pad), lambda b, qi, ki: (0, 0)),              # Wq
                pl.BlockSpec((1, d_pad), lambda b, qi, ki: (0, 0)),               # bq
            ],
            out_specs=pl.BlockSpec((1, Tq, d_pad), lambda b, qi, ki: (b, qi, 0)),
            scratch_shapes=[
                pltpu.VMEM((Tq, d_pad), mxu_dtype),    # Q (pre-scaled), reused across kv
                pltpu.VMEM((Tq, 1), jnp.float32),      # running max m (log2 domain)
                pltpu.VMEM((Tq, 1), jnp.float32),      # running denom l
                pltpu.VMEM((Tq, d_pad), jnp.float32),  # output accumulator
            ],
        ),
        compiler_params=pltpu.CompilerParams(
            dimension_semantics=("parallel", "parallel", "arbitrary"),
            vmem_limit_bytes=vmem_limit_bytes,
        ),
    )(x_c, kv_proj, wq_p, bq_p)

    return out_padded[:, :, :Da] if pad else out_padded


def self_attention_ref(x, wq, bq, wk, bk, wv, bv):
    q = x @ wq + bq
    k = x @ wk + bk
    v = x @ wv + bv
    s = jnp.einsum("bqd,bkd->bqk", q, k) / (k.shape[-1] ** 0.5)
    p = jax.nn.softmax(s, axis=-1)
    return jnp.einsum("bqk,bkd->bqd", p, v)


if __name__ == "__main__":
    B, S = 2, 8
    model_dim, attention_dim = 32, 32

    key = jax.random.PRNGKey(0)
    kx, kwq, kbq, kwk, kbk, kwv, kbv = jax.random.split(key, 7)

    x = jax.random.normal(kx, (B, S, model_dim), dtype=jnp.float32)

    # Deterministic parameter init (mimics nn.Linear uniform init scale)
    lim = 1.0 / (model_dim ** 0.5)
    wq = jax.random.uniform(kwq, (model_dim, attention_dim), jnp.float32, -lim, lim)
    bq = jax.random.uniform(kbq, (attention_dim,), jnp.float32, -lim, lim)
    wk = jax.random.uniform(kwk, (model_dim, attention_dim), jnp.float32, -lim, lim)
    bk = jax.random.uniform(kbk, (attention_dim,), jnp.float32, -lim, lim)
    wv = jax.random.uniform(kwv, (model_dim, attention_dim), jnp.float32, -lim, lim)
    bv = jax.random.uniform(kbv, (attention_dim,), jnp.float32, -lim, lim)

    out = self_attention(x, wq, bq, wk, bk, wv, bv)          # bf16 MXU default
    out = jax.block_until_ready(out)

    ref = self_attention_ref(x, wq, bq, wk, bk, wv, bv)
    assert out.shape == (B, S, attention_dim)
    max_err = float(jnp.max(jnp.abs(out - ref)))
    # bf16 MXU operands (f32 stats/accum): ~1e-2 tolerance vs the f32 reference.
    assert jnp.allclose(out, ref, atol=2e-2, rtol=2e-2), f"mismatch vs reference: {max_err}"

    print("KERNEL_OK")
</pallas_src>

<mosaic_0001>
module attributes {stable_mosaic.version = 11 : i64} {
  func.func @_kv_projection_kernel(%arg0: i32, %arg1: i32, %arg2: memref<1x8x32xbf16, #tpu.memory_space<vmem>>, %arg3: memref<32x256xbf16, #tpu.memory_space<vmem>>, %arg4: memref<1x256xf32, #tpu.memory_space<vmem>>, %arg5: memref<1x8x256xbf16, #tpu.memory_space<vmem>>) attributes {dimension_semantics = [#tpu.dimension_semantics<parallel>, #tpu.dimension_semantics<parallel>], iteration_bounds = array<i64: 2, 1>, scalar_prefetch = 0 : i64, scratch_operands = 0 : i64, tpu.core_type = #tpu.core_type<tc>, window_params = [{transform_indices = @transform_0, window_bounds = array<i64: 1, 8, 32>}, {pipeline_mode = #tpu.pipeline_mode<synchronous>, transform_indices = @transform_1, window_bounds = array<i64: 32, 256>}, {pipeline_mode = #tpu.pipeline_mode<synchronous>, transform_indices = @transform_2, window_bounds = array<i64: 1, 256>}, {transform_indices = @transform_3, window_bounds = array<i64: 1, 8, 256>}]} {
    %c0 = arith.constant 0 : index
    %c0_0 = arith.constant 0 : index
    %c0_1 = arith.constant 0 : index
    %0 = vector.load %arg2[%c0, %c0_0, %c0_1] : memref<1x8x32xbf16, #tpu.memory_space<vmem>>, vector<1x8x32xbf16>
    %1 = vector.shape_cast %0 : vector<1x8x32xbf16> to vector<8x32xbf16>
    %c0_2 = arith.constant 0 : index
    %c0_3 = arith.constant 0 : index
    %2 = vector.load %arg3[%c0_2, %c0_3] : memref<32x256xbf16, #tpu.memory_space<vmem>>, vector<32x256xbf16>
    %cst = arith.constant dense<0.000000e+00> : vector<8x256xf32>
    %3 = tpu.matmul %1, %2, %cst {dimension_numbers = #tpu.dot_dimension_numbers<[1], [0], [0], [1], [0, 0, 1, 1], [], []>} : vector<8x32xbf16>, vector<32x256xbf16>, vector<8x256xf32> -> vector<8x256xf32>
    %c0_4 = arith.constant 0 : index
    %c0_5 = arith.constant 0 : index
    %4 = vector.load %arg4[%c0_4, %c0_5] : memref<1x256xf32, #tpu.memory_space<vmem>>, vector<1x256xf32>
    %5 = vector.broadcast %4 : vector<1x256xf32> to vector<8x256xf32>
    %6 = arith.addf %3, %5 : vector<8x256xf32>
    %7 = arith.truncf %6 : vector<8x256xf32> to vector<8x256xbf16>
    %c0_6 = arith.constant 0 : index
    %c0_7 = arith.constant 0 : index
    %c0_8 = arith.constant 0 : index
    %8 = vector.load %arg5[%c0_6, %c0_7, %c0_8] : memref<1x8x256xbf16, #tpu.memory_space<vmem>>, vector<1x8x256xbf16>
    %9 = vector.shape_cast %8 : vector<1x8x256xbf16> to vector<8x256xbf16>
    %10 = vector.shape_cast %7 : vector<8x256xbf16> to vector<1x8x256xbf16>
    tpu.vector_store %arg5[%c0_6, %c0_7, %c0_8], %10 {strides = array<i32>} : memref<1x8x256xbf16, #tpu.memory_space<vmem>>, vector<1x8x256xbf16>,
    return
  }
  func.func @transform_0(%arg0: i32, %arg1: i32) -> (i32, i32, i32) {
    %c0_i32 = arith.constant 0 : i32
    %c0_i32_0 = arith.constant 0 : i32
    return %arg0, %arg1, %c0_i32 : i32, i32, i32
  }
  func.func @transform_1(%arg0: i32, %arg1: i32) -> (i32, i32) {
    %c0_i32 = arith.constant 0 : i32
    %c0_i32_0 = arith.constant 0 : i32
    %c0_i32_1 = arith.constant 0 : i32
    return %c0_i32, %c0_i32_0 : i32, i32
  }
  func.func @transform_2(%arg0: i32, %arg1: i32) -> (i32, i32) {
    %c0_i32 = arith.constant 0 : i32
    %c0_i32_0 = arith.constant 0 : i32
    %c0_i32_1 = arith.constant 0 : i32
    return %c0_i32, %c0_i32_0 : i32, i32
  }
  func.func @transform_3(%arg0: i32, %arg1: i32) -> (i32, i32, i32) {
    %c0_i32 = arith.constant 0 : i32
    %c0_i32_0 = arith.constant 0 : i32
    return %arg0, %arg1, %c0_i32 : i32, i32, i32
  }
}

</mosaic_0001>

<bundles_post_ra>
// kernel: tpu_custom_call.1
= control target key start
LH: loop header
LB: loop body
LE: loop exit
PB: predicated region body
PF: predicated region fallthrough
CT: control target
= control target key end

     0   :  { %8 = vsyncpa [#allocation3], 0  ;;  %s915_s0 = inlined_call_operand.hbm [shape: bf16[2,8,32], index: 0, kind: input, shape index: {}]   ;;  %s916_s1 = inlined_call_operand.hbm [shape: bf16[32,256], index: 1, kind: input, shape index: {}]   ;;  %s917_s2 = inlined_call_operand.vmem [shape: f32[1,256], index: 2, kind: input, shape index: {}]   ;;  %s918_s3 = inlined_call_operand.hbm [shape: bf16[2,8,256], index: 3, kind: output, shape index: {}]  }
   0x1   :  { %10 = vsyncpa [#allocation3 + $0x1], 0 }
   0x2   :  { %11 = vsyncpa [#allocation6], 0 }
   0x3   :  { %12 = vsyncpa [#allocation4], 0 }
   0x4   :  { %14 = vsyncpa [#allocation4 + $0x1], 0  ;;  %s697_s12 = smov 0   ;;  %s699_s13 = smov 0  }
   0x5   :  { %s701_s14 = smov 0   ;;  %s703_s15 = smov 0  }
   0x6   :  { %s705_s16 = smov 0   ;;  %s707_s17 = smov 0  }
   0x7 LB: > { %s419_s18 = sadd.s32 4294967295, %s669_s17   ;;  %s420_s19 = sadd.s32 4294967294, %s669_s17   ;;  %s669_s17 = sphi %s707_s17, %s20_s17   ;;  %s665_s16 = sphi %s705_s16, %s942_s16   ;;  %s661_s15 = sphi %s703_s15, %s941_s15   ;;  %s657_s14 = sphi %s701_s14, %s940_s14   ;;  %s653_s13 = sphi %s699_s13, %s939_s13   ;;  %s649_s12 = sphi %s697_s12, %s938_s12  }
   0x8   : > { %p54_p0 = scmp.ne.s32.totalorder %s653_s13, %s649_s12  ;;  %p731_p1 = scmp.eq.s32.totalorder %s419_s18, 0 }
   0x9   : > { %p735_p2 = scmp.eq.s32.totalorder %s419_s18, 1  ;;  %p128_p3 = scmp.eq.s32.totalorder %s420_s19, 1 }
   0xa   : > { %s923_s20 = scalar_select %p731_p1, 1, 0 }
   0xb   : > { %s924_s21 = scalar_select %p735_p2, 1, 0 }
   0xc   : > { %p741_p4 = por %p731_p1, %p54_p0  ;;  %p421_p5 = scmp.ge.s32.totalorder %s669_s17, 1 }
   0xd   : > { %p746_p6 = por %p128_p3, %p54_p0  ;;  %p135_p7 = scmp.lt.s32.totalorder %s669_s17, 3 }
   0xe   : > { %s925_s22 = scalar_select %p741_p4, 1, 0 }
   0xf   : > { %s926_s23 = scalar_select %p746_p6, 1, 0 }
  0x10   : > { %p751_p8 = pnand %p421_p5, %p135_p7  ;;  %s671_s25 = smov [#allocation5]  }
  0x11   : > { %s147_s26 = sshll.u32 %s671_s25, 4  ;;  %s32_s28 = sadd.s32 1, %s665_s16  ;;  %s148_s26 = int_to_ptr.vmem [resolvable:$true] %s147_s26 }
  0x12   : > { %s927_s24 = scalar_select %p751_p8, 1, 0 }
  0x13   : > { %p451_p9 = pneg %p751_p8  ;;  %s525_s4 = scalar_lea.hbm %s916_s1, 512 }
  0x14   : > { %p526_p12 = scmp.ne.s32.totalorder %s916_s1, %s525_s4  ;;  %p532_p5 = scmp.lt.u32.totalorder %s525_s4, %s916_s1 }
  0x15   : > { %p760_p11 = pnand %p451_p9, %p731_p1 }
  0x17   : > { %p527_p13 = pneg %p760_p11 }
  0x19   : > { %p528_p0 = pnand %p527_p13, %p526_p12 }
  0x1b   : > { %p529_p3 = pneg %p528_p0 }
  0x1d   : > { %p534_p7 = pnand %p532_p5, %p529_p3 }
  0x1f   : > { %537 = shalt.err (!%p534_p7)
}
  0x20   : > { %s538_s9 = scalar_lea.vmem %s148_s26, 512  ;;  %p546_p1 = scmp.lt.s32.totalorder %s148_s26, %s148_s26 }
  0x21   : > { %p539_p9 = scmp.ne.s32.totalorder %s148_s26, %s538_s9  ;;  %p547_p4 = scmp.lt.s32.totalorder %s538_s9, %s538_s9 }
  0x23   : > { %p541_p10 = pnand %p539_p9, %p527_p13  ;;  %p548_p8 = por %p547_p4, %p546_p1 }
  0x25   : > { %p542_p6 = pneg %p541_p10 }
  0x27   : > { %p549_p2 = pnand %p548_p8, %p542_p6 }
  0x29   : > { %552 = shalt.err (!%p549_p2)
}
  0x2a   : > { %s672_s10 = smov 128   ;;  %s673_s11 = smov 8  }
  0x2b   : > { %454 = dma.hbm_to_vmem [thread:$0]  (!%p760_p11), %s916_s1, 512, %s148_s26, [#allocation6], %s672_s10, %s672_s10, %s673_s11  }
  0x2c   : > { %p34_p1 = scmp.ge.s32.totalorder %s32_s28, 2  ;;  %s41_s25 = sadd.s32 1, %s657_s14 }
  0x2d   : > { %p48_p2 = scmp.ne.s32.totalorder %s657_s14, %s653_s13  ;;  %p49_p4 = scmp.eq.s32.totalorder %s669_s17, 0 }
  0x2e   : > { %s944_s28 = smov (%p34_p1, %s32_s28), 0  ;;  %p930_p8 = scmp.ne.s32.totalorder %s924_s21, 0 }
  0x2f   : > { %p787_p6 = por %p49_p4, %p48_p2  ;;  %s36_s27 = ssub.s32 %s665_s16, %s944_s28 }
  0x30   : > { %p793_p10 = por %p930_p8, %p48_p2  ;;  %p464_p12 = scmp.lt.s32.totalorder %s669_s17, 2 }
  0x31   : > { %p39_p11 = scmp.eq.s32.totalorder %s36_s27, 0  ;;  %s164_s26 = sand.u32 1, %s657_s14  }
  0x32   : > { %s424_s4 = sshll.u32 %s164_s26, 2  ;;  %s425_s6 = sshll.u32 %s665_s16, 6 }
  0x33   : > { %s802_s5 = scalar_select %p39_p11, %s657_s14, %s41_s25  }
  0x34   : > { %s808_s9 = scalar_lea.hbm %s915_s0, %s425_s6  ;;  %s168_s21 = scalar_lea.vmem [#allocation2], %s424_s4 }
  0x35   : > { %s176_s10 = sshll.u32 %s168_s21, 4  ;;  %p814_p13 = pnand %p464_p12, %p787_p6  ;;  %s810_s10 = int_to_ptr.vmem [resolvable:$true] %s176_s10 }
  0x36   : > { %s165_s18 = scalar_lea.sflag [#allocation3], %s164_s26  ;;  %s553_s19 = scalar_lea.hbm %s808_s9, 64 }
  0x37   : > { %p554_p0 = scmp.ne.s32.totalorder %s808_s9, %s553_s19  ;;  %p555_p3 = pneg %p814_p13 }
  0x38   : > { %s558_s4 = scalar_lea.hbm %s915_s0, 128  ;;  %p559_p9 = scmp.lt.u32.totalorder %s808_s9, %s915_s0 }
  0x39   : > { %p556_p5 = pnand %p555_p3, %p554_p0  ;;  %p560_p1 = scmp.lt.u32.totalorder %s558_s4, %s553_s19 }
  0x3a   : > { %p562_p4 = scmp.lt.u32.totalorder %s553_s19, %s808_s9 }
  0x3b   : > { %p557_p7 = pneg %p556_p5  ;;  %p561_p2 = por %p560_p1, %p559_p9 }
  0x3d   : > { %p563_p6 = por %p562_p4, %p561_p2 }
  0x3f   : > { %p564_p8 = pnand %p563_p6, %p557_p7 }
  0x41   : > { %567 = shalt.err (!%p564_p8)
}
  0x42   : > { %s568_s26 = scalar_lea.vmem %s810_s10, 64  ;;  %s674_s7 = smov [#allocation2]  }
  0x43   : > { %p569_p12 = scmp.ne.s32.totalorder %s810_s10, %s568_s26  ;;  %s573_s8 = sshll.u32 %s674_s7, 4  ;;  %s574_s8 = int_to_ptr.vmem [resolvable:$false] %s573_s8 }
  0x44   : > { %s575_s21 = scalar_lea.vmem %s574_s8, 128  ;;  %p576_p5 = scmp.lt.s32.totalorder %s810_s10, %s574_s8 }
  0x45   : > { %p571_p11 = pnand %p569_p12, %p555_p3  ;;  %p577_p9 = scmp.lt.s32.totalorder %s575_s21, %s568_s26 }
  0x47   : > { %p572_p0 = pneg %p571_p11  ;;  %p578_p1 = por %p577_p9, %p576_p5 }
  0x49   : > { %p579_p2 = pnand %p578_p1, %p572_p0 }
  0x4b   : > { %582 = shalt.err (!%p579_p2)
}
  0x4c   : > { %458 = dma.hbm_to_vmem [thread:$0]  (!%p814_p13), %s808_s9, 64, %s810_s10, %s165_s18  }
  0x4d   : > { %p933_p7 = scmp.ne.s32.totalorder %s927_s24, 0 }
  0x4e   : > { %s846_s19 = sand.u32 (!%p933_p7), 1, %s653_s13   ;;  %p934_p3 = scmp.ne.s32.totalorder (!%p933_p7), %s925_s22, 0 }
  0x4f   : > { %185 = sbr.rel (%p933_p7) target bundleno = 330 (0x14a), region = 32  ;;  %s427_s25 = sshll.u32 (!%p933_p7), %s846_s19, 2 }
  0x50   : > { %s188_s27 = scalar_lea.sflag (!%p933_p7), [#allocation3], %s846_s19  ;;  %s191_s4 = scalar_lea.vmem (!%p933_p7), [#allocation2], %s427_s25 }
  0x56   : > { %636 = dma.done.wait (%p934_p3), %s188_s27, 64  }
  0x57   : > { %638 = vsyncadd (%p934_p3), %s188_s27, 4294967232  ;;  %p935_p4 = scmp.ne.s32.totalorder %s923_s20, 0 }
  0x59   : > { %640 = dma.done.wait (%p935_p4), [#allocation6], 512  }
  0x5a   : > { %642 = vsyncadd (%p935_p4), [#allocation6], 4294966784  ;;  %v675_v0 = vmov 0   ;;  %v519_v1 = vld [vmem:[#allocation5 + $0x4] ss:$8 sps:$4 sm:$0xff]   ;;  %vm256_vm0 = vcmask 261120   ;;  %v226_v6 = vlaneseq }
  0x5b   : > { %292 = vmatprep.mubr.bf16.mxu0 %v675_v0  ;;  %v521_v2 = vld [vmem:[#allocation5] ss:$8 sps:$4 sm:$0xff]   ;;  %260 = vmatprep.subr.bf16.mxu0 %v519_v1  ;;  %v522_v3 = vld [vmem:[#allocation5 + $0x14] ss:$8 sps:$4 sm:$0xff]   ;;  %v524_v4 = vld [vmem:[#allocation5 + $0x10] ss:$8 sps:$4 sm:$0xff]  }
  0x5c   : > { %261 = vmatpush1.bf16.msra.mxu0 %v521_v2  ;;  %v219_v5 = vld [vmem:[%s191_s4] sm:$0xf]  ;;  %v227_v7 = vshrl.u32 %v226_v6, 7  ;;  %s429_s24 = sshll.u32 %s846_s19, 3  ;;  %s442_s9 = sshll.u32 %s661_s15, 7 }
  0x5d   : > { %262 = vmatprep.subr.bf16.mxu0 %v522_v3  ;;  %v224_v9 = vld [vmem:[%s917_s2] sm:$0x3]  ;;  %s217_s10 = scalar_lea.vmem [#allocation7], %s429_s24  ;;  %s866_s6 = scalar_lea.hbm %s918_s3, %s442_s9 }
  0x5e   : > { %v228_v8 = vsub.s32 0, %v227_v7  ;;  %v232_v10 = vsub.s32 1, %v227_v7  ;;  %s327_s11 = sshll.u32 %s217_s10, 4  ;;  %s311_s26 = scalar_lea.sflag [#allocation4], %s846_s19  ;;  %s868_s11 = int_to_ptr.vmem [resolvable:$true] %s327_s11 }
  0x5f   : > { %s583_s7 = scalar_lea.vmem %s868_s11, 128  ;;  %s676_s15 = smov [#allocation7]  }
  0x60   : > { %263 = vmatpush1.bf16.msra.mxu0 %v524_v4  ;;  %v229_v11 = vrot.slane %v224_v9, %v228_v8  ;;  %v233_v12 = vrot.slane %v224_v9, %v232_v10  ;;  %p584_p13 = scmp.ne.s32.totalorder %s868_s11, %s583_s7  ;;  %s587_s8 = sshll.u32 %s676_s15, 4  ;;  %s588_s8 = int_to_ptr.vmem [resolvable:$false] %s587_s8 }
  0x61   : > { %s589_s21 = scalar_lea.vmem %s588_s8, 256  ;;  %p590_p12 = scmp.lt.s32.totalorder %s868_s11, %s588_s8 }
  0x62   : > { %p585_p6 = pnand %p584_p13, %p793_p10  ;;  %p591_p11 = scmp.lt.s32.totalorder %s589_s21, %s583_s7 }
  0x63   : > { %434 = vmatmul.mubr.msk.bf16.vlgmr.msra.gmra.mrb[0].mxu0 %vm256_vm0, %v219_v5 }
  0x64   : > { %p586_p8 = pneg %p585_p6  ;;  %p592_p0 = por %p591_p11, %p590_p12 }
  0x66   : > { %p593_p5 = pnand %p592_p0, %p586_p8 }
 0x136   : > { %v294_v13 = vpop.f32.mrb[0].mxu0 }
 0x137   : > { %v295_v14 = vadd.f32 %v294_v13, %v229_v11  ;;  %v296_v15 = vpop.f32.mrb[1].mxu0 }
 0x138   : > { %v297_v16 = vadd.f32 %v296_v15, %v233_v12  ;;  %v298_v17 = vpop.f32.mrb[2].mxu0 }
 0x139   : > { %v299_v18 = vpop.f32.mrb[3].mxu0 }
 0x13a   : > { %v441_v19 = vpack.c.bf16 %v297_v16, %v295_v14 }
 0x13c   : > { %309 = vst [vmem:[%s217_s10] sm:$0xff] %v441_v19 }
 0x13d   : > { %596 = shalt.err (!%p593_p5)
}
 0x13e   : > { %s597_s19 = scalar_lea.hbm %s866_s6, 128  ;;  %s601_s4 = scalar_lea.hbm %s918_s3, 256 }
 0x13f   : > { %p598_p9 = scmp.ne.s32.totalorder %s866_s6, %s597_s19  ;;  %p602_p7 = scmp.lt.u32.totalorder %s866_s6, %s918_s3 }
 0x140   : > { %p603_p3 = scmp.lt.u32.totalorder %s601_s4, %s597_s19  ;;  %p605_p13 = scmp.lt.u32.totalorder %s597_s19, %s866_s6 }
 0x141   : > { %p599_p1 = pnand %p598_p9, %p793_p10 }
 0x142   : > { %p604_p4 = por %p603_p3, %p602_p7 }
 0x143   : > { %p600_p2 = pneg %p599_p1 }
 0x144   : > { %p606_p6 = por %p605_p13, %p604_p4 }
 0x146   : > { %p607_p8 = pnand %p606_p6, %p600_p2 }
 0x148   : > { %610 = shalt.err (!%p607_p8)
}
 0x149   : > { %449 = dma.vmem_to_hbm [thread:$0]  (%p793_p10), %s868_s11, 128, %s866_s6, %s311_s26  }
 0x14a PF: > { %s339_s24 = sand.u32 1, %s649_s12   ;;  %p936_p12 = scmp.ne.s32.totalorder %s926_s23, 0 }
 0x14b   : > { %p937_p11 = scmp.ge.s32.totalorder %s669_s17, 2  ;;  %s340_s9 = scalar_lea.sflag [#allocation4], %s339_s24 }
 0x14d   : > { %p460_p0 = pnand %p937_p11, %p936_p12 }
 0x14f   : > { %644 = dma.done.wait (!%p460_p0), %s340_s9, 128  }
 0x150   : > { %646 = vsyncadd (!%p460_p0), %s340_s9, 4294967168  ;;  %s20_s17 = sadd.s32 1, %s669_s17   ;;  %s938_s12 = smov %s653_s13 }
 0x151   : > { %p17_p5 = scmp.ge.s32.totalorder %s20_s17, 4   ;;  %s939_s13 = smov %s657_s14 }
 0x152   : > { %s940_s14 = smov %s802_s5  ;;  %s941_s15 = smov %s665_s16 }
 0x153   : > { %s942_s16 = smov %s944_s28  ;;  %19 = sbr.rel (!%p17_p5) target bundleno = 7 (0x7), region = 81 }
 0x15a   :  { %345 = vsyncpa [#allocation3], 1 }
 0x15b   :  { %347 = vsyncpa [#allocation3 + $0x1], 1 }
 0x15c   :  { %348 = vsyncpa [#allocation6], 1 }
 0x15d   :  { %349 = vsyncpa [#allocation4], 1 }
 0x15e   :  { %351 = vsyncpa [#allocation4 + $0x1], 1 }

</bundles_post_ra>
